<compile_context>
chip_gen: v5e
topology: v5e:2x2
jax: 0.10.0
libtpu: 0.0.40
codegen_flags: <defaults>
</compile_context>

<pallas_src>
import functools

import jax
import jax.numpy as jnp
from jax.experimental import pallas as pl
from jax.experimental.pallas import tpu as pltpu

LANES = 128
SUBLANES = 8


def _round_up(x, m):
    return (x + m - 1) // m * m


def _mixloss_kernel(x_ref, tgt_ref, hm_ref, out_ref, *,
                    w_ce, w_mse, inv_n, dhw, tile, need_mask):
    # x_ref  : (3, tile, 128)  channels 0,1 = class logits, 2 = regression
    # tgt_ref: (tile, 128)     class ids in {0, 1} (any integer dtype)
    # hm_ref : (tile, 128)     regression target
    # out_ref: (8, 128)        per-(n, row-tile) weighted partial sum
    x0 = x_ref[0].astype(jnp.float32)
    x1 = x_ref[1].astype(jnp.float32)
    x2 = x_ref[2].astype(jnp.float32)
    t = tgt_ref[...].astype(jnp.float32)
    hm = hm_ref[...].astype(jnp.float32)

    # Numerically stable 2-class cross entropy:
    #   ce = logsumexp(x0, x1) - x_t = softplus(d) - t*d,  d = x1 - x0
    d = x1 - x0
    ce = jnp.maximum(d, 0.0) + jnp.log1p(jnp.exp(-jnp.abs(d))) - t * d

    # MSE term on the regression channel vs heatmap.
    diff = x2 - hm
    sq = diff * diff

    def write(ce_v, sq_v):
        # (tile,128) -> (tile/8, 8, 128) -> (8,128): pure VPU adds into a
        # vreg-shaped partial; the final cross-lane reduce happens on host.
        ce_p = ce_v.reshape(-1, SUBLANES, LANES).sum(axis=0)
        sq_p = sq_v.reshape(-1, SUBLANES, LANES).sum(axis=0)
        out_ref[...] = (w_ce * ce_p + w_mse * sq_p) * inv_n

    if need_mask:
        i = pl.program_id(1)
        last = pl.num_programs(1) - 1

        @pl.when(i != last)
        def _():
            write(ce, sq)

        @pl.when(i == last)
        def _():
            row = i * tile + jax.lax.broadcasted_iota(jnp.int32, ce.shape, 0)
            lane = jax.lax.broadcasted_iota(jnp.int32, ce.shape, 1)
            valid = row * LANES + lane < dhw
            write(jnp.where(valid, ce, 0.0), jnp.where(valid, sq, 0.0))
    else:
        write(ce, sq)


def mix_loss(input_ncdhw, target, heatmap, weights=(1.0, 1.0), tile_rows=2048):
    """Pallas equivalent of MixLoss([CrossEntropyLoss(), MSELoss()], cfg).

    loss = w[0] * CE(input[:, 0:2], target) + w[1] * MSE(input[:, 2], heatmap)

    input_ncdhw : [N, 3, D, H, W]  channels 0:2 = class logits, 2 = regression
    target      : [N, D, H, W]     class indices in {0, 1}
    heatmap     : [N, D, H, W]
    """
    N, C, D, H, W = input_ncdhw.shape
    assert C == 3, "MixLoss expects 3 channels (2 class logits + 1 regression)"
    dhw = D * H * W
    n_elems = N * dhw

    # Sublane granularity: sub-32-bit streams pack 2x/4x rows per sublane.
    gran = SUBLANES
    for dt in (input_ncdhw.dtype, target.dtype, heatmap.dtype):
        isz = jnp.dtype(dt).itemsize
        if isz < 4:
            gran = max(gran, SUBLANES * (4 // isz))

    # Contiguous (free) reshapes only -- no channel slicing, no dtype passes.
    x = input_ncdhw.reshape(N, C, dhw)
    tgt = target.reshape(N, dhw)
    hm = heatmap.reshape(N, dhw)

    if dhw % LANES != 0 or (dhw // LANES) < gran:
        # TODO(synk): this pad is a host-side HBM copy; pre-pad D*H*W to a
        # multiple of 128*gran upstream so large volumes stay zero-copy.
        dhw_p = _round_up(dhw, gran * LANES)
        pad = dhw_p - dhw
        x = jnp.pad(x, ((0, 0), (0, 0), (0, pad)))
        tgt = jnp.pad(tgt, ((0, 0), (0, pad)))
        hm = jnp.pad(hm, ((0, 0), (0, pad)))
    else:
        dhw_p = dhw

    rows = dhw_p // LANES
    x = x.reshape(N, C, rows, LANES)
    tgt = tgt.reshape(N, rows, LANES)
    hm = hm.reshape(N, rows, LANES)

    # Largest useful row-tile, rounded to packing granularity and never larger
    # than the array dim (the partial last block is masked in-kernel).
    tile = max(gran, (min(int(tile_rows), rows) // gran) * gran)
    num_tiles = pl.cdiv(rows, tile)
    need_mask = (num_tiles * tile * LANES) != dhw

    kernel = functools.partial(
        _mixloss_kernel,
        w_ce=float(weights[0]),
        w_mse=float(weights[1]),
        inv_n=1.0 / float(n_elems),
        dhw=dhw,
        tile=tile,
        need_mask=need_mask,
    )

    # One fused input stream for the 3 channels + target + heatmap.
    x_spec = pl.BlockSpec((None, C, tile, LANES), lambda n, i: (n, 0, i, 0))
    vol_spec = pl.BlockSpec((None, tile, LANES), lambda n, i: (n, i, 0))
    out_spec = pl.BlockSpec((None, None, SUBLANES, LANES),
                            lambda n, i: (n, i, 0, 0))

    # Both grid axes are parallel (no carried accumulator); per-(n, tile)
    # partials are summed below.  Keeps both v7x TensorCores busy for N == 1.
    compiler_kwargs = dict(dimension_semantics=("parallel", "parallel"))
    step_bytes = tile * LANES * (C * x.dtype.itemsize
                                 + tgt.dtype.itemsize + hm.dtype.itemsize)
    if 2 * step_bytes > (14 << 20):
        # Larger-than-default tiles (v7x tuning): raise the scoped-VMEM budget
        # to cover double buffering, with headroom under the 64 MiB cap.
        compiler_kwargs["vmem_limit_bytes"] = int(
            min(2 * step_bytes + (4 << 20), 48 << 20))

    partials = pl.pallas_call(
        kernel,
        out_shape=jax.ShapeDtypeStruct((N, num_tiles, SUBLANES, LANES),
                                       jnp.float32),
        grid_spec=pltpu.PrefetchScalarGridSpec(
            num_scalar_prefetch=0,
            grid=(N, num_tiles),
            in_specs=[x_spec, vol_spec, vol_spec],
            out_specs=out_spec,
        ),
        compiler_params=pltpu.CompilerParams(**compiler_kwargs),
    )(x, tgt, hm)

    return jnp.sum(partials)


if __name__ == "__main__":
    key = jax.random.PRNGKey(0)
    k1, k2, k3 = jax.random.split(key, 3)

    # Small shapes consistent with the module's 5D slicing: [N, 3, D, H, W]
    N, C, D, H, W = 2, 3, 4, 8, 32
    x = jax.random.normal(k1, (N, C, D, H, W), dtype=jnp.float32)
    target = jax.random.randint(k2, (N, D, H, W), 0, 2, dtype=jnp.int32)
    heatmap = jax.random.normal(k3, (N, D, H, W), dtype=jnp.float32)

    # cfg['LOSS']['WEIGHT'] equivalent (deterministic, set in-script)
    weights = (1.0, 1.0)

    loss = jax.block_until_ready(mix_loss(x, target, heatmap, weights=weights))

    # Pure-JAX reference:
    #   CrossEntropyLoss(input[:, 0:2], target) + MSELoss(input[:, 2], heatmap)
    logits = x[:, 0:2]
    lse = jax.nn.logsumexp(logits, axis=1)
    xt = jnp.take_along_axis(logits, target[:, None], axis=1)[:, 0]
    ce_ref = jnp.mean(lse - xt)
    mse_ref = jnp.mean((x[:, 2] - heatmap) ** 2)
    ref = weights[0] * ce_ref + weights[1] * mse_ref

    assert jnp.allclose(loss, ref, rtol=1e-5, atol=1e-5), (loss, ref)
    print("KERNEL_OK")
</pallas_src>

<mosaic_0001>
module attributes {stable_mosaic.version = 11 : i64} {
  func.func @_mixloss_kernel(%arg0: i32, %arg1: i32, %arg2: memref<1x3x8x128xf32, #tpu.memory_space<vmem>>, %arg3: memref<1x8x128xi32, #tpu.memory_space<vmem>>, %arg4: memref<1x8x128xf32, #tpu.memory_space<vmem>>, %arg5: memref<1x1x8x128xf32, #tpu.memory_space<vmem>>) attributes {dimension_semantics = [#tpu.dimension_semantics<parallel>, #tpu.dimension_semantics<parallel>], iteration_bounds = array<i64: 2, 1>, scalar_prefetch = 0 : i64, scratch_operands = 0 : i64, tpu.core_type = #tpu.core_type<tc>, window_params = [{transform_indices = @transform_0, window_bounds = array<i64: 1, 3, 8, 128>}, {transform_indices = @transform_1, window_bounds = array<i64: 1, 8, 128>}, {transform_indices = @transform_2, window_bounds = array<i64: 1, 8, 128>}, {transform_indices = @transform_3, window_bounds = array<i64: 1, 1, 8, 128>}]} {
    %c0 = arith.constant 0 : index
    %c0_0 = arith.constant 0 : index
    %c0_1 = arith.constant 0 : index
    %c0_2 = arith.constant 0 : index
    %0 = vector.load %arg2[%c0, %c0_0, %c0_1, %c0_2] : memref<1x3x8x128xf32, #tpu.memory_space<vmem>>, vector<1x1x8x128xf32>
    %1 = vector.shape_cast %0 : vector<1x1x8x128xf32> to vector<8x128xf32>
    %c0_3 = arith.constant 0 : index
    %c1 = arith.constant 1 : index
    %c0_4 = arith.constant 0 : index
    %c0_5 = arith.constant 0 : index
    %2 = vector.load %arg2[%c0_3, %c1, %c0_4, %c0_5] : memref<1x3x8x128xf32, #tpu.memory_space<vmem>>, vector<1x1x8x128xf32>
    %3 = vector.shape_cast %2 : vector<1x1x8x128xf32> to vector<8x128xf32>
    %c0_6 = arith.constant 0 : index
    %c2 = arith.constant 2 : index
    %c0_7 = arith.constant 0 : index
    %c0_8 = arith.constant 0 : index
    %4 = vector.load %arg2[%c0_6, %c2, %c0_7, %c0_8] : memref<1x3x8x128xf32, #tpu.memory_space<vmem>>, vector<1x1x8x128xf32>
    %5 = vector.shape_cast %4 : vector<1x1x8x128xf32> to vector<8x128xf32>
    %c0_9 = arith.constant 0 : index
    %c0_10 = arith.constant 0 : index
    %c0_11 = arith.constant 0 : index
    %6 = vector.load %arg3[%c0_9, %c0_10, %c0_11] : memref<1x8x128xi32, #tpu.memory_space<vmem>>, vector<1x8x128xi32>
    %7 = vector.shape_cast %6 : vector<1x8x128xi32> to vector<8x128xi32>
    %8 = arith.sitofp %7 : vector<8x128xi32> to vector<8x128xf32>
    %c0_12 = arith.constant 0 : index
    %c0_13 = arith.constant 0 : index
    %c0_14 = arith.constant 0 : index
    %9 = vector.load %arg4[%c0_12, %c0_13, %c0_14] : memref<1x8x128xf32, #tpu.memory_space<vmem>>, vector<1x8x128xf32>
    %10 = vector.shape_cast %9 : vector<1x8x128xf32> to vector<8x128xf32>
    %11 = arith.subf %3, %1 : vector<8x128xf32>
    %cst = arith.constant 0.000000e+00 : f32
    %12 = vector.broadcast %cst : f32 to vector<8x128xf32>
    %13 = arith.maximumf %11, %12 : vector<8x128xf32>
    %14 = math.absf %11 : vector<8x128xf32>
    %cst_15 = arith.constant 0.000000e+00 : f32
    %15 = vector.broadcast %cst_15 : f32 to vector<8x128xf32>
    %16 = arith.subf %15, %14 : vector<8x128xf32>
    %17 = math.exp %16 : vector<8x128xf32>
    %18 = math.log1p %17 : vector<8x128xf32>
    %19 = arith.addf %13, %18 : vector<8x128xf32>
    %20 = arith.mulf %8, %11 : vector<8x128xf32>
    %21 = arith.subf %19, %20 : vector<8x128xf32>
    %22 = arith.subf %5, %10 : vector<8x128xf32>
    %23 = arith.mulf %22, %22 : vector<8x128xf32>
    %24 = vector.shape_cast %21 : vector<8x128xf32> to vector<1x8x128xf32>
    %cst_16 = arith.constant dense<0.000000e+00> : vector<8x128xf32>
    %25 = vector.multi_reduction <add>, %24, %cst_16 [0] : vector<1x8x128xf32> to vector<8x128xf32>
    %26 = vector.shape_cast %23 : vector<8x128xf32> to vector<1x8x128xf32>
    %cst_17 = arith.constant dense<0.000000e+00> : vector<8x128xf32>
    %27 = vector.multi_reduction <add>, %26, %cst_17 [0] : vector<1x8x128xf32> to vector<8x128xf32>
    %cst_18 = arith.constant 1.000000e+00 : f32
    %28 = vector.broadcast %cst_18 : f32 to vector<8x128xf32>
    %29 = arith.mulf %28, %25 : vector<8x128xf32>
    %cst_19 = arith.constant 1.000000e+00 : f32
    %30 = vector.broadcast %cst_19 : f32 to vector<8x128xf32>
    %31 = arith.mulf %30, %27 : vector<8x128xf32>
    %32 = arith.addf %29, %31 : vector<8x128xf32>
    %cst_20 = arith.constant 4.8828125E-4 : f32
    %33 = vector.broadcast %cst_20 : f32 to vector<8x128xf32>
    %34 = arith.mulf %32, %33 : vector<8x128xf32>
    %c0_21 = arith.constant 0 : index
    %c0_22 = arith.constant 0 : index
    %c0_23 = arith.constant 0 : index
    %c0_24 = arith.constant 0 : index
    %35 = vector.load %arg5[%c0_21, %c0_22, %c0_23, %c0_24] : memref<1x1x8x128xf32, #tpu.memory_space<vmem>>, vector<1x1x8x128xf32>
    %36 = vector.shape_cast %35 : vector<1x1x8x128xf32> to vector<8x128xf32>
    %37 = vector.shape_cast %34 : vector<8x128xf32> to vector<1x1x8x128xf32>
    tpu.vector_store %arg5[%c0_21, %c0_22, %c0_23, %c0_24], %37 {strides = array<i32>} : memref<1x1x8x128xf32, #tpu.memory_space<vmem>>, vector<1x1x8x128xf32>,
    return
  }
  func.func @transform_0(%arg0: i32, %arg1: i32) -> (i32, i32, i32, i32) {
    %c0_i32 = arith.constant 0 : i32
    %c0_i32_0 = arith.constant 0 : i32
    %c0_i32_1 = arith.constant 0 : i32
    return %arg0, %c0_i32, %arg1, %c0_i32_0 : i32, i32, i32, i32
  }
  func.func @transform_1(%arg0: i32, %arg1: i32) -> (i32, i32, i32) {
    %c0_i32 = arith.constant 0 : i32
    %c0_i32_0 = arith.constant 0 : i32
    return %arg0, %arg1, %c0_i32 : i32, i32, i32
  }
  func.func @transform_2(%arg0: i32, %arg1: i32) -> (i32, i32, i32) {
    %c0_i32 = arith.constant 0 : i32
    %c0_i32_0 = arith.constant 0 : i32
    return %arg0, %arg1, %c0_i32 : i32, i32, i32
  }
  func.func @transform_3(%arg0: i32, %arg1: i32) -> (i32, i32, i32, i32) {
    %c0_i32 = arith.constant 0 : i32
    %c0_i32_0 = arith.constant 0 : i32
    %c0_i32_1 = arith.constant 0 : i32
    return %arg0, %arg1, %c0_i32, %c0_i32_0 : i32, i32, i32, i32
  }
}

</mosaic_0001>

<bundles_post_ra>
// kernel: tpu_custom_call.1
= control target key start
LH: loop header
LB: loop body
LE: loop exit
PB: predicated region body
PF: predicated region fallthrough
CT: control target
= control target key end

     0   :  { %s933_s0 = inlined_call_operand.hbm [shape: f32[2,3,8,128], index: 0, kind: input, shape index: {}]   ;;  %s934_s1 = inlined_call_operand.hbm [shape: s32[2,8,128], index: 1, kind: input, shape index: {}]   ;;  %s935_s2 = inlined_call_operand.hbm [shape: f32[2,8,128], index: 2, kind: input, shape index: {}]   ;;  %s936_s3 = inlined_call_operand.hbm [shape: f32[2,1,8,128], index: 3, kind: output, shape index: {}]  }
   0x1   :  { %940 = sst [smem:[#allocation15_spill]] %s934_s1 }
   0x2   :  { %941 = sst [smem:[#allocation16_spill]] %s935_s2 }
   0x3   :  { %8 = vsyncpa [#allocation3], 0 }
   0x4   :  { %10 = vsyncpa [#allocation3 + $0x1], 0 }
   0x5   :  { %11 = vsyncpa [#allocation6], 0 }
   0x6   :  { %13 = vsyncpa [#allocation6 + $0x1], 0 }
   0x7   :  { %14 = vsyncpa [#allocation4], 0 }
   0x8   :  { %16 = vsyncpa [#allocation4 + $0x1], 0  ;;  %s765_s12 = smov 0   ;;  %s767_s13 = smov 0  }
   0x9   :  { %s769_s14 = smov 0   ;;  %s771_s15 = smov 0  }
   0xa   :  { %s773_s16 = smov 0   ;;  %s775_s17 = smov 0  }
   0xb LB: > { %942 = sst [smem:[#allocation12_spill]] %s737_s16  ;;  %s796_s18 = sadd.s32 4294967295, %s741_s17   ;;  %s741_s17 = sphi %s775_s17, %s22_s17   ;;  %s737_s16 = sphi %s773_s16, %s956_s16   ;;  %s733_s15 = sphi %s771_s15, %s955_s15   ;;  %s729_s14 = sphi %s769_s14, %s959_s14   ;;  %s725_s13 = sphi %s767_s13, %s958_s13   ;;  %s721_s12 = sphi %s765_s12, %s957_s12  }
   0xc   : > { %s466_s19 = sadd.s32 4294967294, %s741_s17   ;;  %s34_s20 = sadd.s32 1, %s737_s16 }
   0xd   : > { %s43_s21 = sadd.s32 1, %s729_s14  ;;  %p36_p0 = scmp.ge.s32.totalorder %s34_s20, 2 }
   0xe   : > { %p50_p1 = scmp.ne.s32.totalorder %s729_s14, %s725_s13  ;;  %p51_p2 = scmp.eq.s32.totalorder %s741_s17, 0 }
   0xf   : > { %p56_p3 = scmp.ne.s32.totalorder %s725_s13, %s721_s12  ;;  %s961_s20 = smov (%p36_p0, %s34_s20), 0 }
  0x10   : > { %943 = sst [smem:[#allocation13_spill]] %s961_s20  ;;  %p808_p4 = por %p51_p2, %p50_p1 }
  0x11   : > { %p57_p5 = scmp.eq.s32.totalorder %s796_s18, 0  ;;  %s38_s23 = ssub.s32 %s737_s16, %s961_s20 }
  0x12   : > { %p138_p6 = scmp.eq.s32.totalorder %s796_s18, 1  ;;  %p41_p7 = scmp.eq.s32.totalorder %s38_s23, 0 }
  0x13   : > { %p816_p8 = por %p57_p5, %p56_p3  ;;  %p144_p10 = scmp.eq.s32.totalorder %s466_s19, 1 }
  0x14   : > { %p820_p9 = por %p138_p6, %p50_p1  ;;  %p468_p12 = scmp.ge.s32.totalorder %s741_s17, 2 }
  0x15   : > { %s825_s26 = scalar_select %p41_p7, %s729_s14, %s43_s21  }
  0x16   : > { %p827_p11 = por %p144_p10, %p56_p3  ;;  %p509_p13 = scmp.lt.s32.totalorder %s741_s17, 2 }
  0x17   : > { %947 = sst [smem:[#allocation14_spill]] %s825_s26  ;;  %s834_s28 = sand.u32 1, %s729_s14  }
  0x18   : > { %s187_s29 = sand.u32 1, %s741_s17   ;;  %s937_s30 = sshll.u32 %s834_s28, 3 }
  0x19   : > { %p840_p0 = pnand %p509_p13, %p808_p4  ;;  %s471_s5 = sshll.u32 %s737_s16, 3 }
  0x1a   : > { %s950_s1 = sld [smem:[#allocation15_spill]]  ;;  %s191_s10 = scalar_lea.vmem [#allocation5], %s937_s30 }
  0x1b   : > { %s200_s11 = sshll.u32 %s191_s10, 4  ;;  %s188_s19 = scalar_lea.sflag [#allocation6], %s187_s29  ;;  %s201_s11 = int_to_ptr.vmem [resolvable:$true] %s200_s11 }
  0x1c   : > { %s951_s2 = sld [smem:[#allocation16_spill]]  ;;  %p474_p1 = scmp.ge.s32.totalorder %s741_s17, 1 }
  0x1d   : > { %p225_p2 = scmp.lt.s32.totalorder %s741_s17, 3  ;;  %s484_s7 = smul.u32 24, %s834_s28 }
  0x1e   : > { %s743_s22 = smov 128   ;;  %s953_s20 = sshll.u32 %s834_s28, 3 }
  0x1f   : > { %p857_p3 = pnand %p474_p1, %p225_p2  ;;  %s211_s26 = scalar_lea.vmem [#allocation7], %s953_s20 }
  0x20   : > { %s196_s8 = scalar_lea.hbm %s950_s1, %s471_s5  ;;  %s876_s30 = sand.u32 (!%p857_p3), 1, %s725_s13  }
  0x21   : > { %s198_s9 = sshll.u32 %s196_s8, 4  ;;  %s485_s8 = smul.u32 24, %s737_s16  ;;  %s199_s9 = int_to_ptr.hbm [resolvable:$true] %s198_s9 }
  0x22   : > { %501 = dma.hbm_to_vmem [thread:$0]  (!%p840_p0), %s199_s9, 128, %s201_s11, %s188_s19  }
  0x23   : > { %s216_s23 = scalar_lea.hbm %s951_s2, %s471_s5  ;;  %s174_s9 = scalar_lea.hbm %s933_s0, %s485_s8 }
  0x24   : > { %s218_s10 = sshll.u32 %s216_s23, 4  ;;  %s168_s11 = scalar_lea.vmem [#allocation2], %s484_s7  ;;  %s219_s10 = int_to_ptr.hbm [resolvable:$true] %s218_s10 }
  0x25   : > { %s177_s1 = sshll.u32 %s168_s11, 4  ;;  %s175_s21 = sshll.u32 %s174_s9, 4  ;;  %s178_s1 = int_to_ptr.vmem [resolvable:$true] %s177_s1  ;;  %s176_s21 = int_to_ptr.hbm [resolvable:$true] %s175_s21 }
  0x26   : > { %s165_s5 = scalar_lea.sflag [#allocation3], %s834_s28  ;;  %s744_s2 = smov 8  }
  0x27   : > { %498 = dma.hbm_to_vmem [thread:$0]  (!%p840_p0), %s176_s21, 384, %s178_s1, %s165_s5, %s743_s22, %s743_s22, %s744_s2  }
  0x28   : > { %s220_s16 = sshll.u32 %s211_s26, 4  ;;  %229 = sbr.rel (%p857_p3) target bundleno = 88 (0x58), region = 32  ;;  %s221_s16 = int_to_ptr.vmem [resolvable:$true] %s220_s16 }
  0x29   : > { %504 = dma.hbm_to_vmem [thread:$0]  (!%p840_p0), %s219_s10, 128, %s221_s16, %s188_s19  }
  0x2a   : > { %s486_s23 = smul.u32 (!%p857_p3), 24, %s876_s30  ;;  %s232_s7 = scalar_lea.sflag (!%p857_p3), [#allocation3], %s876_s30 }
  0x2c   : > { %s235_s8 = scalar_lea.vmem (!%p857_p3), [#allocation2], %s486_s23 }
  0x2d   : > { %708 = dma.done.wait (%p816_p8), %s232_s7, 384  }
  0x2e   : > { %710 = vsyncadd (%p816_p8), %s232_s7, 4294966912  ;;  %s241_s1 = sand.u32 1, %s796_s18   ;;  %s886_s2 = sshll.u32 %s876_s30, 3 }
  0x2f   : > { %s242_s16 = scalar_lea.sflag [#allocation6], %s241_s1  ;;  %s245_s20 = scalar_lea.vmem [#allocation5], %s886_s2 }
  0x30   : > { %712 = dma.done.wait (%p816_p8), %s242_s16, 256  }
  0x31   : > { %714 = vsyncadd (%p816_p8), %s242_s16, 4294967040  ;;  %v289_v0 = vld [vmem:[%s235_s8] sm:$0xff]  ;;  %v478_v1 = vld [vmem:[%s235_s8 + $0x8] sm:$0xff]  ;;  %s255_s18 = scalar_lea.vmem [#allocation7], %s886_s2  ;;  %s481_s24 = sshll.u32 %s733_s15, 3 }
  0x32   : > { %v297_v2 = vsub.f32 %v478_v1, %v289_v0  ;;  %v294_v9 = vld [vmem:[%s245_s20] sm:$0xff]  ;;  %v296_v13 = vld [vmem:[%s255_s18] sm:$0xff]  ;;  %s334_s4 = scalar_lea.hbm %s936_s3, %s481_s24  ;;  %s288_s19 = scalar_lea.vmem [#allocation8], %s886_s2 }
  0x33   : > { %v479_v12 = vld [vmem:[%s235_s8 + $0x10] sm:$0xff]  ;;  %v295_v14 = vcvt.s32.f32 %v294_v9  ;;  %s336_s6 = sshll.u32 %s288_s19, 4  ;;  %s338_s10 = sshll.u32 %s334_s4, 4  ;;  %s337_s6 = int_to_ptr.vmem [resolvable:$true] %s336_s6  ;;  %s339_s10 = int_to_ptr.hbm [resolvable:$true] %s338_s10 }
  0x34   : > { %v299_v3 = vand.u32 2147483647, %v297_v2  ;;  %v298_v17 = vmax.f32 %v297_v2, 0.0  ;;  %v315_v18 = vsub.f32 %v479_v12, %v296_v13  ;;  %s323_s29 = scalar_lea.sflag [#allocation4], %s876_s30  ;;  %s669_s15 = sshra.s32 %s339_s10, 4  ;;  %s670_s15 = int_to_ptr.hbm [resolvable:$true] %s669_s15 }
  0x35   : > { %v313_v20 = vmul.f32 %v297_v2, %v295_v14  ;;  %s671_s9 = scalar_lea.hbm %s670_s15, 8  ;;  %s675_s5 = scalar_lea.hbm %s936_s3, 16 }
  0x36   : > { %v300_v4 = vsub.f32 0.0, %v299_v3  ;;  %v316_v23 = vmul.f32 %v315_v18, %v315_v18  ;;  %p672_p4 = scmp.ne.s32.totalorder %s670_s15, %s671_s9  ;;  %p676_p7 = scmp.lt.s32.totalorder %s670_s15, %s936_s3 }
  0x37   : > { %p677_p8 = scmp.lt.s32.totalorder %s675_s5, %s671_s9 }
  0x38   : > { %v301_v5 = vmul.f32 1.442695, %v300_v4  ;;  %p673_p5 = pnand %p672_p4, %p820_p9 }
  0x39   : > { %p678_p10 = por %p677_p8, %p676_p7 }
  0x3a   : > { %561 = vpow2.f32 %v301_v5  ;;  %p674_p6 = pneg %p673_p5 }
  0x3c   : > { %p679_p13 = pnand %p678_p10, %p674_p6 }
  0x40   : > { %v562_v6 = vpop.eup %561 }
  0x41   : > { %v303_v7 = vadd.f32 1.0, %v562_v6  ;;  %v306_v8 = vmul.f32 -0.5, %v562_v6  ;;  %v309_v11 = vand.u32 2147483647, %v562_v6 }
  0x43   : > { %563 = vlog2.f32 %v303_v7  ;;  %v307_v10 = vadd.f32 1.0, %v306_v8  ;;  %vm310_vm0 = vcmp.lt.f32.partialorder %v309_v11, 0.0004427343 }
  0x45   : > { %v308_v15 = vmul.f32 %v562_v6, %v307_v10 }
  0x49   : > { %v564_v16 = vpop.eup %563 }
  0x4a   : > { %v305_v19 = vmul.f32 0.6931472, %v564_v16 }
  0x4c   : > { %v311_v21 = vsel %vm310_vm0, %v308_v15, %v305_v19 }
  0x4d   : > { %v312_v22 = vadd.f32 %v311_v21, %v298_v17 }
  0x4f   : > { %v314_v24 = vsub.f32 %v312_v22, %v313_v20 }
  0x51   : > { %v319_v25 = vadd.f32 %v316_v23, %v314_v24 }
  0x53   : > { %v320_v26 = vmul.f32 0.00048828125, %v319_v25 }
  0x55   : > { %321 = vst [vmem:[%s288_s19] sm:$0xff] %v320_v26 }
  0x56   : > { %682 = shalt.err (!%p679_p13)
}
  0x57   : > { %493 = dma.vmem_to_hbm [thread:$0]  (%p820_p9), %s337_s6, 128, %s339_s10, %s323_s29  }
  0x58 PF: > { %s350_s30 = sand.u32 1, %s721_s12   ;;  %p506_p0 = pnand %p468_p12, %p827_p11 }
  0x59   : > { %s351_s7 = scalar_lea.sflag [#allocation4], %s350_s30 }
  0x5a   : > { %p507_p1 = pneg %p506_p0 }
  0x5c   : > { %716 = dma.done.wait (%p507_p1), %s351_s7, 128  }
  0x5d   : > { %718 = vsyncadd (%p507_p1), %s351_s7, 4294967168  ;;  %s22_s17 = sadd.s32 1, %s741_s17   ;;  %s954_s8 = sld [smem:[#allocation14_spill]] }
  0x5e   : > { %p19_p2 = scmp.ge.s32.totalorder %s22_s17, 4   ;;  %s955_s15 = sld [smem:[#allocation12_spill]] }
  0x5f   : > { %s956_s16 = sld [smem:[#allocation13_spill]]  ;;  %s957_s12 = smov %s725_s13 }
  0x60   : > { %s958_s13 = smov %s729_s14  ;;  %21 = sbr.rel (!%p19_p2) target bundleno = 11 (0xb), region = 103 }
  0x63   : > { %s959_s14 = smov %s954_s8 }
  0x65   :  { %357 = vsyncpa [#allocation3], 1 }
  0x66   :  { %359 = vsyncpa [#allocation3 + $0x1], 1 }
  0x67   :  { %360 = vsyncpa [#allocation6], 1 }
  0x68   :  { %362 = vsyncpa [#allocation6 + $0x1], 1 }
  0x69   :  { %363 = vsyncpa [#allocation4], 1 }
  0x6a   :  { %365 = vsyncpa [#allocation4 + $0x1], 1 }

</bundles_post_ra>
